<compile_context>
chip_gen: v5e
topology: v5e:2x2
jax: 0.10.0
libtpu: 0.0.40
codegen_flags: <defaults>
</compile_context>

<pallas_src>
import functools
import math

import jax
import jax.numpy as jnp
from jax.experimental import pallas as pl
from jax.experimental.pallas import tpu as pltpu


_LANE = 128
# Conservative per-kernel VMEM budget: stays under v7x's 64 MiB physical VMEM
# (v5e/v6e have 128 MiB) while leaving headroom for internal scratch.
_VMEM_SOFT_LIMIT = 56 * 1024 * 1024
_TARGET_BLOCK_BYTES = 2 * 1024 * 1024      # sweet spot for HBM-bound tiles


def _round_up(x, m):
    return (x + m - 1) // m * m


def _choose_batch_tile(B, per_batch_bytes):
    """Largest divisor of B whose block stays ~<= target size while keeping at
    least min(B, 4) grid steps alive for pipelining / v7x's two TensorCores."""
    max_tb = max(1, B // min(B, 4))
    best = 1
    for tb in range(1, max_tb + 1):
        if B % tb == 0 and tb * per_batch_bytes <= _TARGET_BLOCK_BYTES:
            best = tb
    return best


def _choose_lane_tile(hwp, C, itemsize):
    """Largest multiple-of-128 divisor of hwp giving a ~<= target-sized block."""
    n = hwp // _LANE
    best = _LANE
    for d in range(1, n + 1):
        if n % d == 0 and C * (_LANE * d) * itemsize <= _TARGET_BLOCK_BYTES:
            best = _LANE * d
    return best


def _channel_conv_sigmoid(p, w_ref, k_size):
    """Conv1d (zero pad, no bias, cross-correlation) along the channel axis of
    p:(TB, C, 1) float32, followed by sigmoid.  Matches PyTorch Conv1d."""
    C = p.shape[1]
    pad = (k_size - 1) // 2
    if k_size > 1:
        # Gate tensor is tiny (TB, C + k - 1, 1): pad + static sublane slices
        # are negligible here (pltpu.roll + edge mask would also work).
        p_pad = jnp.pad(p, ((0, 0), (pad, k_size - 1 - pad), (0, 0)))
    else:
        p_pad = p
    y = jnp.zeros_like(p)
    for t in range(k_size):                      # k_size is static & tiny
        y = y + w_ref[0, t] * p_pad[:, t:t + C, :]
    return jax.nn.sigmoid(y)                     # (TB, C, 1) float32


def _eca_fused_kernel(w_ref, x_ref, o_ref, *, k_size, hw):
    # w_ref: (1, k_size) f32 in SMEM;  x_ref / o_ref: (TB, C, HWp) in VMEM.
    # Lane padding holds zeros, so sum(...)/hw is the true spatial mean; the
    # sum accumulates in f32 even for bf16 inputs.
    p = jnp.sum(x_ref[...], axis=-1, keepdims=True,
                dtype=jnp.float32) * (1.0 / hw)            # (TB, C, 1)
    s = _channel_conv_sigmoid(p, w_ref, k_size)            # (TB, C, 1)
    # Re-read x_ref for the scale (rather than keeping the pooled read live
    # across the gate math) to bound vreg pressure on large blocks; the extra
    # VMEM read is cheap.
    o_ref[...] = (x_ref[...] * s).astype(o_ref.dtype)


def _eca_apply_kernel(w_ref, p_ref, x_ref, o_ref, *, k_size):
    # Two-pass path, pass 2.
    # w_ref: (1, k_size) f32 SMEM; p_ref: (1, C, 1) f32 pooled means (VMEM);
    # x_ref / o_ref: (1, C, T) lane tile of the feature map.
    # Gate recompute per tile is O(C * k) -- negligible vs. the C*T multiply.
    s = _channel_conv_sigmoid(p_ref[...], w_ref, k_size)
    o_ref[...] = (x_ref[...] * s).astype(o_ref.dtype)


def eca_forward(x, weight, *, force_two_pass=False):
    """x: (B, C, H, W) float32 or bfloat16; weight: (1, k_size) f32 Conv1d weight."""
    B, C, H, W = x.shape
    k_size = weight.shape[-1]
    HW = H * W
    HWp = _round_up(HW, _LANE)          # lane-dense last dim -> unmasked stores
    itemsize = x.dtype.itemsize
    weight = weight.reshape(1, k_size).astype(jnp.float32)

    xf = x.reshape(B, C, HW)
    if HWp != HW:
        # TODO(synk): in production fold this pad into the producer layout to
        # avoid the extra XLA pad/slice pass over x.
        xf = jnp.pad(xf, ((0, 0), (0, 0), (0, HWp - HW)))

    per_batch_bytes = C * HWp * itemsize
    # Fused path keeps in+out double-buffered (TB, C, HWp) blocks in VMEM.
    fused_need = 4 * per_batch_bytes + (1 << 20)
    use_fused = (not force_two_pass) and fused_need <= _VMEM_SOFT_LIMIT

    if use_fused:
        TB = _choose_batch_tile(B, per_batch_bytes)
        vmem_limit = int(min(_VMEM_SOFT_LIMIT,
                             max(32 * 1024 * 1024,
                                 4 * TB * per_batch_bytes + (8 << 20))))
        out = pl.pallas_call(
            functools.partial(_eca_fused_kernel, k_size=k_size, hw=HW),
            out_shape=jax.ShapeDtypeStruct((B, C, HWp), x.dtype),
            grid_spec=pltpu.PrefetchScalarGridSpec(
                num_scalar_prefetch=0,
                grid=(B // TB,),
                in_specs=[
                    pl.BlockSpec(memory_space=pltpu.MemorySpace.SMEM),   # conv weight
                    pl.BlockSpec((TB, C, HWp), lambda b: (b, 0, 0)),     # x block
                ],
                out_specs=pl.BlockSpec((TB, C, HWp), lambda b: (b, 0, 0)),
            ),
            compiler_params=pltpu.CompilerParams(
                dimension_semantics=("parallel",),
                vmem_limit_bytes=vmem_limit),
        )(weight, xf)
    else:
        # Pass 1: pooled spatial means (tiny output; f32 accumulation).
        p = jnp.mean(x, axis=(2, 3), dtype=jnp.float32).reshape(B, C, 1)
        # Pass 2: conv + sigmoid + scale, tiled over (batch, lane tiles).
        T = _choose_lane_tile(HWp, C, itemsize)
        vmem_limit = int(min(_VMEM_SOFT_LIMIT,
                             max(32 * 1024 * 1024,
                                 4 * C * T * itemsize + (8 << 20))))
        out = pl.pallas_call(
            functools.partial(_eca_apply_kernel, k_size=k_size),
            out_shape=jax.ShapeDtypeStruct((B, C, HWp), x.dtype),
            grid_spec=pltpu.PrefetchScalarGridSpec(
                num_scalar_prefetch=0,
                grid=(B, HWp // T),
                in_specs=[
                    pl.BlockSpec(memory_space=pltpu.MemorySpace.SMEM),     # conv weight
                    pl.BlockSpec((1, C, 1), lambda b, t: (b, 0, 0)),       # pooled means
                    pl.BlockSpec((1, C, T), lambda b, t: (b, 0, t)),       # x lane tile
                ],
                out_specs=pl.BlockSpec((1, C, T), lambda b, t: (b, 0, t)),
            ),
            compiler_params=pltpu.CompilerParams(
                dimension_semantics=("parallel", "parallel"),
                vmem_limit_bytes=vmem_limit),
        )(weight, p, xf)

    if HWp != HW:
        out = out[..., :HW]
    return out.reshape(B, C, H, W)


def eca_reference(x, weight):
    """Pure-JAX (XLA) reference mirroring the PyTorch forward."""
    B, C, H, W = x.shape
    k = weight.shape[-1]
    pad = (k - 1) // 2
    p = jnp.mean(x, axis=(2, 3))                       # (B, C)
    y = jax.lax.conv_general_dilated(
        p[:, None, :],                                  # (B, 1, C)
        weight.reshape(1, 1, k),                        # (1, 1, k)
        window_strides=(1,), padding=[(pad, pad)],
        dimension_numbers=("NCH", "OIH", "NCH"))
    s = jax.nn.sigmoid(y[:, 0, :])                      # (B, C)
    return x * s[:, :, None, None]


if __name__ == "__main__":
    # Small shapes consistent with the module; C=8 gives adaptive k_size=3.
    B, C, H, W = 2, 8, 16, 16
    gamma, b = 2, 1
    k_size = int(abs(math.log(C, 2) + b / gamma))
    k_size += k_size % 2 - 1                           # module's rule -> odd k (3)

    key = jax.random.PRNGKey(0)
    kx, kw = jax.random.split(key)
    x = jax.random.normal(kx, (B, C, H, W), dtype=jnp.float32)

    # Deterministic Conv1d weight init (kaiming-uniform-like bound = 1/sqrt(k)).
    bound = 1.0 / math.sqrt(k_size)
    weight = jax.random.uniform(kw, (1, k_size), dtype=jnp.float32,
                                minval=-bound, maxval=bound)

    ref = eca_reference(x, weight)

    # Fused single-pass path (batch-packed, lane-dense blocks).
    out = jax.block_until_ready(eca_forward(x, weight))
    assert out.shape == x.shape and out.dtype == x.dtype
    assert jnp.allclose(out, ref, atol=1e-5, rtol=1e-5)

    # Two-pass (XLA pool + tiled Pallas gate-apply) path, forced, to exercise
    # the large-feature-map code on the small test shape.
    out2 = jax.block_until_ready(eca_forward(x, weight, force_two_pass=True))
    assert jnp.allclose(out2, ref, atol=1e-5, rtol=1e-5)

    # bf16 I/O path (f32 accumulation for the pooled mean and gate math).
    xb = x.astype(jnp.bfloat16)
    refb = eca_reference(xb.astype(jnp.float32), weight)
    outb = jax.block_until_ready(eca_forward(xb, weight))
    assert outb.dtype == jnp.bfloat16
    assert jnp.allclose(outb.astype(jnp.float32), refb, atol=5e-2, rtol=5e-2)

    print("KERNEL_OK")
</pallas_src>

<mosaic_0001>
module attributes {stable_mosaic.version = 11 : i64} {
  func.func @_eca_fused_kernel(%arg0: i32, %arg1: memref<1x3xf32, #tpu.memory_space<smem>>, %arg2: memref<1x8x256xf32, #tpu.memory_space<vmem>>, %arg3: memref<1x8x256xf32, #tpu.memory_space<vmem>>) attributes {dimension_semantics = [#tpu.dimension_semantics<parallel>], iteration_bounds = array<i64: 2>, scalar_prefetch = 0 : i64, scratch_operands = 0 : i64, tpu.core_type = #tpu.core_type<tc>, window_params = [{transform_indices = @transform_0, window_bounds = array<i64: 1, 3>}, {transform_indices = @transform_1, window_bounds = array<i64: 1, 8, 256>}, {transform_indices = @transform_2, window_bounds = array<i64: 1, 8, 256>}]} {
    %c0 = arith.constant 0 : index
    %c0_0 = arith.constant 0 : index
    %c0_1 = arith.constant 0 : index
    %0 = vector.load %arg2[%c0, %c0_0, %c0_1] : memref<1x8x256xf32, #tpu.memory_space<vmem>>, vector<1x8x256xf32>
    %cst = arith.constant dense<0.000000e+00> : vector<1x8xf32>
    %1 = vector.multi_reduction <add>, %0, %cst [2] : vector<1x8x256xf32> to vector<1x8xf32>
    %2 = vector.shape_cast %1 : vector<1x8xf32> to vector<1x8x1xf32>
    %cst_2 = arith.constant 3.906250e-03 : f32
    %3 = vector.broadcast %cst_2 : f32 to vector<1x8x1xf32>
    %4 = arith.mulf %2, %3 : vector<1x8x1xf32>
    %c0_i32 = arith.constant 0 : i32
    %5 = arith.sitofp %c0_i32 : i32 to f32
    %6 = vector.broadcast %5 : f32 to vector<1x1x1xf32>
    %7 = tpu.concatenate %6, %4 in 1 : vector<1x1x1xf32>, vector<1x8x1xf32> -> vector<1x9x1xf32>
    %8 = vector.broadcast %5 : f32 to vector<1x1x1xf32>
    %9 = tpu.concatenate %7, %8 in 1 : vector<1x9x1xf32>, vector<1x1x1xf32> -> vector<1x10x1xf32>
    %cst_3 = arith.constant 0.000000e+00 : f32
    %10 = vector.broadcast %cst_3 : f32 to vector<1x8x1xf32>
    %c0_4 = arith.constant 0 : index
    %c0_5 = arith.constant 0 : index
    %11 = memref.load %arg1[%c0_4, %c0_5] : memref<1x3xf32, #tpu.memory_space<smem>>
    %12 = vector.extract_strided_slice %9 {offsets = [0, 0, 0], sizes = [1, 8, 1], strides = [1, 1, 1]} : vector<1x10x1xf32> to vector<1x8x1xf32>
    %13 = vector.broadcast %11 : f32 to vector<1x8x1xf32>
    %14 = arith.mulf %13, %12 : vector<1x8x1xf32>
    %15 = arith.addf %10, %14 : vector<1x8x1xf32>
    %c0_6 = arith.constant 0 : index
    %c1 = arith.constant 1 : index
    %16 = memref.load %arg1[%c0_6, %c1] : memref<1x3xf32, #tpu.memory_space<smem>>
    %17 = vector.extract_strided_slice %9 {offsets = [0, 1, 0], sizes = [1, 8, 1], strides = [1, 1, 1]} : vector<1x10x1xf32> to vector<1x8x1xf32>
    %18 = vector.broadcast %16 : f32 to vector<1x8x1xf32>
    %19 = arith.mulf %18, %17 : vector<1x8x1xf32>
    %20 = arith.addf %15, %19 : vector<1x8x1xf32>
    %c0_7 = arith.constant 0 : index
    %c2 = arith.constant 2 : index
    %21 = memref.load %arg1[%c0_7, %c2] : memref<1x3xf32, #tpu.memory_space<smem>>
    %22 = vector.extract_strided_slice %9 {offsets = [0, 2, 0], sizes = [1, 8, 1], strides = [1, 1, 1]} : vector<1x10x1xf32> to vector<1x8x1xf32>
    %23 = vector.broadcast %21 : f32 to vector<1x8x1xf32>
    %24 = arith.mulf %23, %22 : vector<1x8x1xf32>
    %25 = arith.addf %20, %24 : vector<1x8x1xf32>
    %26 = arith.negf %25 : vector<1x8x1xf32>
    %27 = math.exp %26 : vector<1x8x1xf32>
    %cst_8 = arith.constant 1.000000e+00 : f32
    %28 = vector.broadcast %cst_8 : f32 to vector<1x8x1xf32>
    %29 = arith.addf %28, %27 : vector<1x8x1xf32>
    %30 = arith.divf %28, %29 : vector<1x8x1xf32>
    %c0_9 = arith.constant 0 : index
    %c0_10 = arith.constant 0 : index
    %c0_11 = arith.constant 0 : index
    %31 = vector.load %arg2[%c0_9, %c0_10, %c0_11] : memref<1x8x256xf32, #tpu.memory_space<vmem>>, vector<1x8x256xf32>
    %32 = vector.broadcast %30 : vector<1x8x1xf32> to vector<1x8x256xf32>
    %33 = arith.mulf %31, %32 : vector<1x8x256xf32>
    %c0_12 = arith.constant 0 : index
    %c0_13 = arith.constant 0 : index
    %c0_14 = arith.constant 0 : index
    %34 = vector.load %arg3[%c0_12, %c0_13, %c0_14] : memref<1x8x256xf32, #tpu.memory_space<vmem>>, vector<1x8x256xf32>
    tpu.vector_store %arg3[%c0_12, %c0_13, %c0_14], %33 {strides = array<i32>} : memref<1x8x256xf32, #tpu.memory_space<vmem>>, vector<1x8x256xf32>,
    return
  }
  func.func @transform_0(%arg0: i32) -> (i32, i32) {
    %c0_i32 = arith.constant 0 : i32
    %c0_i32_0 = arith.constant 0 : i32
    %c0_i32_1 = arith.constant 0 : i32
    return %c0_i32, %c0_i32_0 : i32, i32
  }
  func.func @transform_1(%arg0: i32) -> (i32, i32, i32) {
    %c0_i32 = arith.constant 0 : i32
    %c0_i32_0 = arith.constant 0 : i32
    %c0_i32_1 = arith.constant 0 : i32
    return %arg0, %c0_i32, %c0_i32_0 : i32, i32, i32
  }
  func.func @transform_2(%arg0: i32) -> (i32, i32, i32) {
    %c0_i32 = arith.constant 0 : i32
    %c0_i32_0 = arith.constant 0 : i32
    %c0_i32_1 = arith.constant 0 : i32
    return %arg0, %c0_i32, %c0_i32_0 : i32, i32, i32
  }
}

</mosaic_0001>

<bundles_post_ra>
// kernel: tpu_custom_call.1
= control target key start
LH: loop header
LB: loop body
LE: loop exit
PB: predicated region body
PF: predicated region fallthrough
CT: control target
= control target key end

     0   :  { %7 = vsyncpa [#allocation5], 0  ;;  %s703_s0 = inlined_call_operand.hbm [shape: f32[1,3], index: 0, kind: input, shape index: {}]   ;;  %s704_s1 = inlined_call_operand.hbm [shape: f32[2,8,256], index: 1, kind: input, shape index: {}]   ;;  %s705_s2 = inlined_call_operand.hbm [shape: f32[2,8,256], index: 2, kind: output, shape index: {}]  }
   0x1   :  { %8 = vsyncpa [#allocation3], 0 }
   0x2   :  { %10 = vsyncpa [#allocation3 + $0x1], 0 }
   0x3   :  { %11 = vsyncpa [#allocation4], 0 }
   0x4   :  { %13 = vsyncpa [#allocation4 + $0x1], 0  ;;  %s561_s9 = smov 0   ;;  %s563_s10 = smov 0  }
   0x5   :  { %s565_s11 = smov 0   ;;  %s567_s12 = smov 0  }
   0x6 LB: > { %s582_s13 = sadd.s32 4294967295, %s542_s12   ;;  %s343_s14 = sadd.s32 4294967294, %s542_s12   ;;  %s542_s12 = sphi %s567_s12, %s715_s12   ;;  %s538_s11 = sphi %s565_s11, %s714_s11   ;;  %s534_s10 = sphi %s563_s10, %s713_s10   ;;  %s530_s9 = sphi %s561_s9, %s712_s9  }
   0x7   : > { %p60_p0 = scmp.ne.s32.totalorder %s534_s10, %s530_s9  ;;  %p61_p1 = scmp.eq.s32.totalorder %s582_s13, 0 }
   0x8   : > { %p84_p2 = scmp.eq.s32.totalorder %s582_s13, 1  ;;  %p90_p3 = scmp.eq.s32.totalorder %s343_s14, 1 }
   0x9   : > { %p591_p4 = por %p61_p1, %p60_p0  ;;  %p344_p5 = scmp.ge.s32.totalorder %s542_s12, 1 }
   0xa   : > { %p596_p6 = por %p90_p3, %p60_p0  ;;  %p97_p7 = scmp.lt.s32.totalorder %s542_s12, 3 }
   0xb   : > { %s109_s19 = sshll.u32 %s703_s0, 4  ;;  %s612_s21 = sadd.s32 1, %s542_s12   ;;  %s110_s19 = int_to_ptr.hbm [resolvable:$true] %s109_s19 }
   0xc   : > { %p604_p8 = pnand %p344_p5, %p97_p7  ;;  %s44_s22 = ssub.s32 %s542_s12, %s612_s21 }
   0xd   : > { %p45_p12 = scmp.eq.s32.totalorder %s44_s22, 0  ;;  %s47_s23 = sadd.s32 1, %s538_s11 }
   0xe   : > { %p372_p10 = pneg %p604_p8  ;;  %p54_p13 = scmp.ne.s32.totalorder %s538_s11, %s534_s10 }
   0xf   : > { %s544_s24 = smov [#allocation2]   ;;  %p55_p0 = scmp.eq.s32.totalorder %s542_s12, 0 }
  0x10   : > { %p373_p11 = pnand %p372_p10, %p61_p1  ;;  %p627_p3 = por %p84_p2, %p54_p13 }
  0x11   : > { %s622_s25 = scalar_select %p45_p12, %s538_s11, %s47_s23  }
  0x12   : > { %375 = dma.hbm_to_smem (!%p373_p11), %s110_s19, 16, %s544_s24, [#allocation5]  }
  0x13   : > { %s120_s27 = sand.u32 1, %s538_s11   ;;  %p56_p5 = por %p55_p0, %p54_p13 }
  0x14   : > { %p385_p7 = scmp.lt.s32.totalorder %s542_s12, 2  ;;  %s347_s28 = sshll.u32 %s120_s27, 4 }
  0x15   : > { %s362_s29 = sshll.u32 %s542_s12, 4  ;;  %s124_s6 = scalar_lea.vmem [#allocation6], %s347_s28 }
  0x16   : > { %s129_s4 = scalar_lea.hbm %s704_s1, %s362_s29  ;;  %s133_s7 = sshll.u32 %s124_s6, 4  ;;  %s134_s7 = int_to_ptr.vmem [resolvable:$true] %s133_s7 }
  0x17   : > { %s131_s5 = sshll.u32 %s129_s4, 4  ;;  %p637_p10 = pnand %p385_p7, %p56_p5  ;;  %s132_s5 = int_to_ptr.hbm [resolvable:$true] %s131_s5 }
  0x18   : > { %s121_s14 = scalar_lea.sflag [#allocation3], %s120_s27  ;;  %s442_s17 = sshra.s32 %s132_s5, 4  ;;  %s443_s17 = int_to_ptr.hbm [resolvable:$true] %s442_s17 }
  0x19   : > { %s444_s18 = scalar_lea.hbm %s443_s17, 16  ;;  %p446_p11 = pneg %p637_p10 }
  0x1a   : > { %p445_p2 = scmp.ne.s32.totalorder %s443_s17, %s444_s18  ;;  %s449_s23 = scalar_lea.hbm %s704_s1, 32 }
  0x1b   : > { %p450_p0 = scmp.lt.s32.totalorder %s443_s17, %s704_s1  ;;  %p451_p5 = scmp.lt.s32.totalorder %s449_s23, %s444_s18 }
  0x1c   : > { %p447_p12 = pnand %p446_p11, %p445_p2 }
  0x1d   : > { %p452_p7 = por %p451_p5, %p450_p0 }
  0x1e   : > { %p448_p13 = pneg %p447_p12 }
  0x20   : > { %p453_p9 = pnand %p452_p7, %p448_p13 }
  0x22   : > { %456 = shalt.err (!%p453_p9)
}
  0x23   : > { %379 = dma.hbm_to_vmem [thread:$0]  (!%p637_p10), %s132_s5, 256, %s134_s7, %s121_s14  }
  0x24   : > { %142 = sbr.rel (%p604_p8) target bundleno = 330 (0x14a), region = 28 }
  0x29   : > { %517 = dma.done.wait (%p61_p1), [#allocation5], 16  }
  0x2a   : > { %519 = vsyncadd (%p61_p1), [#allocation5], 4294967280  ;;  %s658_s27 = sand.u32 1, %s534_s10  }
  0x2b   : > { %s352_s29 = sshll.u32 %s658_s27, 4  ;;  %s150_s30 = scalar_lea.sflag [#allocation3], %s658_s27 }
  0x2c   : > { %s153_s3 = scalar_lea.vmem [#allocation6], %s352_s29 }
  0x2d   : > { %521 = dma.done.wait (%p591_p4), %s150_s30, 256  }
  0x2e   : > { %523 = vsyncadd (%p591_p4), %s150_s30, 4294967040 }
  0x2f   : > { %159 = sfence }
  0x30   : > { %v176_v0 = vld [vmem:[%s153_s3] sm:$0xff]  ;;  %v177_v1 = vld [vmem:[%s153_s3 + $0x8] sm:$0xff]  ;;  %s354_s20 = sld [smem:[#allocation2 + $0x1]]  ;;  %v545_v3 = vmov 0   ;;  %vm185_vm0 = vcmask 1040384   ;;  %vm198_vm1 = vcmask 1046528  }
  0x31   : > { %v178_v2 = vadd.f32 %v177_v1, %v176_v0  ;;  %s355_s4 = sld [smem:[#allocation2 + $0x2]]  ;;  %422 = vset.pattern.permute.xlu0 %v545_v3  ;;  %vm210_vm2 = vcmask 1045504   ;;  %s363_s15 = sshll.u32 %s582_s13, 4 }
  0x32   : > { %s188_s5 = sld [smem:[#allocation2]]  ;;  %s256_s8 = scalar_lea.hbm %s705_s2, %s363_s15 }
  0x33   : > { %179 = vadd.xlane.f32.xlu0 %v178_v2  ;;  %s175_s14 = scalar_lea.vmem [#allocation7], %s352_s29  ;;  %s260_s18 = sshll.u32 %s256_s8, 4  ;;  %s261_s18 = int_to_ptr.hbm [resolvable:$true] %s260_s18 }
  0x34   : > { %s258_s17 = sshll.u32 %s175_s14, 4  ;;  %s245_s19 = scalar_lea.sflag [#allocation4], %s658_s27  ;;  %s259_s17 = int_to_ptr.vmem [resolvable:$true] %s258_s17 }
  0x35   : > { %s486_s22 = sshra.s32 %s261_s18, 4  ;;  %s492_s28 = scalar_lea.hbm %s705_s2, 32  ;;  %s487_s22 = int_to_ptr.hbm [resolvable:$true] %s486_s22 }
  0x36   : > { %v193_v6 = vstv %s354_s20  ;;  %s488_s13 = scalar_lea.hbm %s487_s22, 16  ;;  %p493_p9 = scmp.lt.s32.totalorder %s487_s22, %s705_s2 }
  0x37   : > { %v205_v7 = vstv %s355_s4  ;;  %p489_p1 = scmp.ne.s32.totalorder %s487_s22, %s488_s13  ;;  %p494_p10 = scmp.lt.s32.totalorder %s492_s28, %s488_s13 }
  0x38   : > { %v189_v11 = vstv %s188_s5 }
  0x39   : > { %p490_p4 = pnand %p489_p1, %p627_p3  ;;  %p495_p2 = por %p494_p10, %p493_p9 }
  0x3b   : > { %p491_p8 = pneg %p490_p4 }
  0x3d   : > { %p496_p11 = pnand %p495_p2, %p491_p8 }
  0xa6   : > { %v180_v4 = vpop.xlane.xlu0 %179 }
  0xa7   : > { %v181_v5 = vmul.f32 0.00390625, %v180_v4 }
  0xa9   : > { %v183_v8 = vrot.slane %v181_v5, 7 }
  0xab   : > { %v186_v9 = vsel %vm185_vm0, 0.0, %v183_v8  ;;  %v187_v10 = vsel %vm185_vm0, %v183_v8, 0.0 }
  0xac   : > { %v194_v12 = vmul.f32 %v193_v6, %v186_v9  ;;  %v195_v13 = vmul.f32 %v193_v6, %v187_v10  ;;  %v206_v14 = vmul.f32 %v205_v7, %v186_v9  ;;  %v207_v15 = vmul.f32 %v205_v7, %v187_v10 }
  0xad   : > { %v190_v19 = vmul.f32 %v189_v11, %v186_v9 }
  0xae   : > { %v199_v16 = vrot.slane %v194_v12, 1  ;;  %v200_v17 = vrot.slane %v195_v13, 1  ;;  %v211_v18 = vrot.slane %v206_v14, 2  ;;  %v212_v20 = vrot.slane %v207_v15, 2 }
  0xb0   : > { %v201_v21 = vsel %vm198_vm1, %v199_v16, %v200_v17  ;;  %v213_v23 = vsel %vm210_vm2, %v211_v18, %v212_v20 }
  0xb1   : > { %v203_v22 = vadd.f32 %v201_v21, %v190_v19 }
  0xb3   : > { %v215_v24 = vadd.f32 %v213_v23, %v203_v22 }
  0xb5   : > { %v356_v25 = vmul.f32 -1.442695, %v215_v24 }
  0xb7   : > { %423 = vpow2.f32 %v356_v25 }
  0xbd   : > { %v424_v26 = vpop.eup %423 }
  0xbe   : > { %v219_v27 = vadd.f32 1.0, %v424_v26 }
  0xc0   : > { %425 = vrcp.f32 %v219_v27  ;;  %v231_v31 = vand.u32 2147483648, %v219_v27  ;;  %v229_v33 = vand.u32 2147483647, %v219_v27  ;;  %vm225_vm4 = vweird.f32 %v219_v27 }
  0xc2   : > { %v232_v35 = vor.u32 1.1754944e-38, %v231_v31  ;;  %vm230_vm6 = vcmp.eq.f32.partialorder %v229_v33, 8.507059e+37 }
  0xc6   : > { %v426_v28 = vpop.eup %425 }
  0xc7   : > { %v221_v29 = vmul.f32 %v426_v28, %v219_v27  ;;  %vm226_vm3 = vweird.f32 %v426_v28 }
  0xc8   : > { %vm227_vm5 = vmor %vm225_vm4, %vm226_vm3 }
  0xc9   : > { %v222_v30 = vsub.f32 1.0, %v221_v29 }
  0xcb   : > { %v223_v32 = vmul.f32 %v426_v28, %v222_v30 }
  0xcd   : > { %v224_v34 = vadd.f32 %v426_v28, %v223_v32 }
  0xcf   : > { %v228_v36 = vsel %vm227_vm5, %v426_v28, %v224_v34 }
  0xd0   : > { %v233_v37 = vsel %vm230_vm6, %v232_v35, %v228_v36 }
  0xd1   : > { %237 = vperm.xlu0 %422, %v233_v37  }
 0x143   : > { %v238_v38 = vpop.permute.xlu0 %237 }
 0x144   : > { %v240_v39 = vmul.f32 %v238_v38, %v176_v0  ;;  %v241_v40 = vmul.f32 %v238_v38, %v177_v1 }
 0x146   : > { %242 = vst [vmem:[%s175_s14] sm:$0xff] %v240_v39 }
 0x147   : > { %243 = vst [vmem:[%s175_s14 + $0x8] sm:$0xff] %v241_v40 }
 0x148   : > { %499 = shalt.err (!%p496_p11)
}
 0x149   : > { %370 = dma.vmem_to_hbm [thread:$0]  (%p627_p3), %s259_s17, 256, %s261_s18, %s245_s19  }
 0x14a PF: > { %s272_s27 = sand.u32 1, %s530_s9   ;;  %p711_p12 = scmp.ge.s32.totalorder %s542_s12, 2 }
 0x14b   : > { %s273_s3 = scalar_lea.sflag [#allocation4], %s272_s27 }
 0x14c   : > { %p381_p13 = pnand %p711_p12, %p596_p6 }
 0x14e   : > { %p382_p0 = pneg %p381_p13 }
 0x150   : > { %525 = dma.done.wait (%p382_p0), %s273_s3, 256  }
 0x151   : > { %527 = vsyncadd (%p382_p0), %s273_s3, 4294967040  ;;  %p16_p5 = scmp.ge.s32.totalorder %s612_s21, 4   ;;  %s712_s9 = smov %s534_s10 }
 0x152   : > { %s713_s10 = smov %s538_s11  ;;  %s714_s11 = smov %s622_s25 }
 0x153   : > { %s715_s12 = smov %s612_s21  ;;  %18 = sbr.rel (!%p16_p5) target bundleno = 6 (0x6), region = 78 }
 0x158   :  { %279 = vsyncpa [#allocation3], 1 }
 0x159   :  { %281 = vsyncpa [#allocation3 + $0x1], 1 }
 0x15a   :  { %282 = vsyncpa [#allocation4], 1 }
 0x15b   :  { %284 = vsyncpa [#allocation4 + $0x1], 1 }
 0x15c   :  { %285 = vsyncpa [#allocation5], 1 }
 0x15d   :  { %287 = vsyncpa [#allocation5 + $0x1], 1 }

</bundles_post_ra>
